<compile_context>
chip_gen: v7x
topology: tpu7x:2x2x1
jax: 0.10.0
libtpu: 0.0.40
codegen_flags: <defaults>
</compile_context>

<pallas_src>
import jax
import jax.numpy as jnp
from jax import lax
from jax.experimental import pallas as pl
from jax.experimental.pallas import tpu as pltpu

BN_EPS = 1e-5


def _graph_conv_kernel(feat_ref, wblk_ref, params_ref, akron_ref, out_ref):
    # feat_ref   : (B, V*Din)    flattened features, column order (v, i)
    # wblk_ref   : (V*Din, V*O)  block-diagonal per-vertex Linear weights
    # params_ref : (3, V*O)      row 0 = Linear bias, row 1 = BN gamma, row 2 = BN beta
    # akron_ref  : (V*O, V*O)    kron(adj.T, I_O): adjacency aggregation as one matmul
    # out_ref    : (B, V*O)      relu(adjacency-aggregated features), column order (v, o)

    # All V per-vertex Linears at once: one MXU matmul on block-diagonal weights.
    z = jnp.dot(feat_ref[...], wblk_ref[...], preferred_element_type=jnp.float32)
    z = z + params_ref[0:1, :]                                   # Linear bias

    # BatchNorm1d (training mode): per-(vertex, feature) batch stats over the B axis.
    mu = jnp.mean(z, axis=0, keepdims=True)
    var = jnp.mean((z - mu) ** 2, axis=0, keepdims=True)
    z_hat = (z - mu) * lax.rsqrt(var + BN_EPS)                   # rsqrt -> EUP (free slot)
    y = params_ref[1:2, :] * z_hat + params_ref[2:3, :]

    # Adjacency aggregation (second MXU matmul) + ReLU, lane-dense unmasked store.
    agg = jnp.dot(y, akron_ref[...], preferred_element_type=jnp.float32)
    out_ref[...] = jnp.maximum(agg, 0.0).astype(out_ref.dtype)


def graph_conv_block(feat, W, b, gamma, beta, adj):
    """feat: [B, V, Din]; W: [V, Din, O] (nn.Linear weight^T per vertex);
    b/gamma/beta: [V, O]; adj: [V, V].  Returns [B, V, O] (matches PyTorch forward)."""
    B, V, Din = feat.shape
    O = W.shape[-1]
    f32 = jnp.float32

    # --- wrapper-side layout plumbing (one-time parameter prep, not hot-path compute) ---
    feat_flat = feat.reshape(B, V * Din).astype(f32)              # columns ordered (v, i)
    # Block-diagonal weights: wblk[v*Din+i, u*O+o] = W[v,i,o] * delta(v,u)
    w_blk = jnp.einsum('vio,vu->viuo', W.astype(f32),
                       jnp.eye(V, dtype=f32)).reshape(V * Din, V * O)
    # Bias / gamma / beta packed into one (3, V*O) block (single DMA), columns (v, o).
    params = jnp.stack([b.reshape(V * O), gamma.reshape(V * O),
                        beta.reshape(V * O)], axis=0).astype(f32)
    # Aggregation matrix: akron[v*O+o', u*O+o] = adj[u,v] * delta(o',o)
    a_kron = jnp.kron(adj.astype(f32).T, jnp.eye(O, dtype=f32))   # (V*O, V*O)

    out2d = pl.pallas_call(
        _graph_conv_kernel,
        out_shape=jax.ShapeDtypeStruct((B, V * O), f32),
        grid_spec=pltpu.PrefetchScalarGridSpec(
            num_scalar_prefetch=0,
            grid=(1,),                                            # single invocation
            in_specs=[
                pl.BlockSpec((B, V * Din), lambda i: (0, 0)),     # feat_flat
                pl.BlockSpec((V * Din, V * O), lambda i: (0, 0)),  # block-diagonal W
                pl.BlockSpec((3, V * O), lambda i: (0, 0)),       # bias/gamma/beta
                pl.BlockSpec((V * O, V * O), lambda i: (0, 0)),   # kron(adj.T, I_O)
            ],
            out_specs=pl.BlockSpec((B, V * O), lambda i: (0, 0)),
        ),
        compiler_params=pltpu.CompilerParams(
            dimension_semantics=("arbitrary",)),
    )(feat_flat, w_blk, params, a_kron)

    # Columns are ordered (v, o) -> free row-major reshape to [B, V, O]; no transpose.
    return out2d.reshape(B, V, O)


def ref_forward(feat, W, b, gamma, beta, adj, eps=BN_EPS):
    """Pure-JAX reference mirroring the PyTorch forward (training-mode BN, with bias)."""
    z = jnp.einsum('bvi,vio->bvo', feat, W) + b[None, :, :]
    mu = jnp.mean(z, axis=0, keepdims=True)
    var = jnp.mean((z - mu) ** 2, axis=0, keepdims=True)
    y = gamma[None] * (z - mu) / jnp.sqrt(var + eps) + beta[None]
    agg = jnp.einsum('vu,buo->bvo', adj, y)
    return jnp.maximum(agg, 0.0)


if __name__ == "__main__":
    B, V, DIN, DOUT = 8, 8, 32, 32

    key = jax.random.PRNGKey(0)
    k_w, k_b, k_g, k_be, k_x = jax.random.split(key, 5)

    # Deterministic synthetic parameters (shapes implied by the module __init__).
    W = 0.1 * jax.random.normal(k_w, (V, DIN, DOUT), jnp.float32)   # Linear weight^T per vertex
    b = 0.1 * jax.random.normal(k_b, (V, DOUT), jnp.float32)        # Linear bias per vertex
    gamma = 1.0 + 0.1 * jax.random.normal(k_g, (V, DOUT), jnp.float32)
    beta = 0.1 * jax.random.normal(k_be, (V, DOUT), jnp.float32)

    # Deterministic normalized ring-graph adjacency (self-loops + neighbors, row-normalized).
    eye = jnp.eye(V, dtype=jnp.float32)
    ring = jnp.roll(eye, 1, axis=1) + jnp.roll(eye, -1, axis=1) + eye
    adj = ring / jnp.sum(ring, axis=1, keepdims=True)

    feat = jax.random.normal(k_x, (B, V, DIN), jnp.float32)

    out = graph_conv_block(feat, W, b, gamma, beta, adj)
    out = jax.block_until_ready(out)

    ref = ref_forward(feat, W, b, gamma, beta, adj)
    assert out.shape == (B, V, DOUT)
    assert jnp.allclose(out, ref, atol=1e-4, rtol=1e-4), (
        f"max abs err {jnp.max(jnp.abs(out - ref))}")

    print("KERNEL_OK")
</pallas_src>

<mosaic_0001>
module attributes {stable_mosaic.version = 11 : i64} {
  func.func @_graph_conv_kernel(%arg0: i32, %arg1: memref<8x256xf32, #tpu.memory_space<vmem>>, %arg2: memref<256x256xf32, #tpu.memory_space<vmem>>, %arg3: memref<3x256xf32, #tpu.memory_space<vmem>>, %arg4: memref<256x256xf32, #tpu.memory_space<vmem>>, %arg5: memref<8x256xf32, #tpu.memory_space<vmem>>) attributes {dimension_semantics = [#tpu.dimension_semantics<arbitrary>], iteration_bounds = array<i64: 1>, scalar_prefetch = 0 : i64, scratch_operands = 0 : i64, tpu.core_type = #tpu.core_type<tc>, window_params = [{pipeline_mode = #tpu.pipeline_mode<synchronous>, transform_indices = @transform_0, window_bounds = array<i64: 8, 256>}, {pipeline_mode = #tpu.pipeline_mode<synchronous>, transform_indices = @transform_1, window_bounds = array<i64: 256, 256>}, {pipeline_mode = #tpu.pipeline_mode<synchronous>, transform_indices = @transform_2, window_bounds = array<i64: 3, 256>}, {pipeline_mode = #tpu.pipeline_mode<synchronous>, transform_indices = @transform_3, window_bounds = array<i64: 256, 256>}, {pipeline_mode = #tpu.pipeline_mode<synchronous>, transform_indices = @transform_4, window_bounds = array<i64: 8, 256>}]} {
    %c0 = arith.constant 0 : index
    %c0_0 = arith.constant 0 : index
    %0 = vector.load %arg1[%c0, %c0_0] : memref<8x256xf32, #tpu.memory_space<vmem>>, vector<8x256xf32>
    %c0_1 = arith.constant 0 : index
    %c0_2 = arith.constant 0 : index
    %1 = vector.load %arg2[%c0_1, %c0_2] : memref<256x256xf32, #tpu.memory_space<vmem>>, vector<256x256xf32>
    %cst = arith.constant dense<0.000000e+00> : vector<8x256xf32>
    %2 = tpu.matmul %0, %1, %cst {dimension_numbers = #tpu.dot_dimension_numbers<[1], [0], [0], [1], [0, 0, 1, 1], [], []>} : vector<8x256xf32>, vector<256x256xf32>, vector<8x256xf32> -> vector<8x256xf32>
    %c0_3 = arith.constant 0 : index
    %c0_4 = arith.constant 0 : index
    %3 = vector.load %arg3[%c0_3, %c0_4] : memref<3x256xf32, #tpu.memory_space<vmem>>, vector<1x256xf32>
    %4 = vector.broadcast %3 : vector<1x256xf32> to vector<8x256xf32>
    %5 = arith.addf %2, %4 : vector<8x256xf32>
    %cst_5 = arith.constant dense<0.000000e+00> : vector<256xf32>
    %6 = vector.multi_reduction <add>, %5, %cst_5 [0] : vector<8x256xf32> to vector<256xf32>
    %7 = vector.shape_cast %6 : vector<256xf32> to vector<1x256xf32>
    %cst_6 = arith.constant 8.000000e+00 : f32
    %8 = vector.broadcast %cst_6 : f32 to vector<1x256xf32>
    %9 = arith.divf %7, %8 : vector<1x256xf32>
    %10 = vector.broadcast %9 : vector<1x256xf32> to vector<8x256xf32>
    %11 = arith.subf %5, %10 : vector<8x256xf32>
    %12 = arith.mulf %11, %11 : vector<8x256xf32>
    %cst_7 = arith.constant dense<0.000000e+00> : vector<256xf32>
    %13 = vector.multi_reduction <add>, %12, %cst_7 [0] : vector<8x256xf32> to vector<256xf32>
    %14 = vector.shape_cast %13 : vector<256xf32> to vector<1x256xf32>
    %cst_8 = arith.constant 8.000000e+00 : f32
    %15 = vector.broadcast %cst_8 : f32 to vector<1x256xf32>
    %16 = arith.divf %14, %15 : vector<1x256xf32>
    %17 = vector.broadcast %9 : vector<1x256xf32> to vector<8x256xf32>
    %18 = arith.subf %5, %17 : vector<8x256xf32>
    %cst_9 = arith.constant 9.99999974E-6 : f32
    %19 = vector.broadcast %cst_9 : f32 to vector<1x256xf32>
    %20 = arith.addf %16, %19 : vector<1x256xf32>
    %21 = math.rsqrt %20 : vector<1x256xf32>
    %22 = vector.broadcast %21 : vector<1x256xf32> to vector<8x256xf32>
    %23 = arith.mulf %18, %22 : vector<8x256xf32>
    %c1 = arith.constant 1 : index
    %c0_10 = arith.constant 0 : index
    %24 = vector.load %arg3[%c1, %c0_10] : memref<3x256xf32, #tpu.memory_space<vmem>>, vector<1x256xf32>
    %25 = vector.broadcast %24 : vector<1x256xf32> to vector<8x256xf32>
    %26 = arith.mulf %25, %23 : vector<8x256xf32>
    %c2 = arith.constant 2 : index
    %c0_11 = arith.constant 0 : index
    %27 = vector.load %arg3[%c2, %c0_11] : memref<3x256xf32, #tpu.memory_space<vmem>>, vector<1x256xf32>
    %28 = vector.broadcast %27 : vector<1x256xf32> to vector<8x256xf32>
    %29 = arith.addf %26, %28 : vector<8x256xf32>
    %c0_12 = arith.constant 0 : index
    %c0_13 = arith.constant 0 : index
    %30 = vector.load %arg4[%c0_12, %c0_13] : memref<256x256xf32, #tpu.memory_space<vmem>>, vector<256x256xf32>
    %cst_14 = arith.constant dense<0.000000e+00> : vector<8x256xf32>
    %31 = tpu.matmul %29, %30, %cst_14 {dimension_numbers = #tpu.dot_dimension_numbers<[1], [0], [0], [1], [0, 0, 1, 1], [], []>} : vector<8x256xf32>, vector<256x256xf32>, vector<8x256xf32> -> vector<8x256xf32>
    %cst_15 = arith.constant 0.000000e+00 : f32
    %32 = vector.broadcast %cst_15 : f32 to vector<8x256xf32>
    %33 = arith.maximumf %31, %32 : vector<8x256xf32>
    %c0_16 = arith.constant 0 : index
    %c0_17 = arith.constant 0 : index
    %34 = vector.load %arg5[%c0_16, %c0_17] : memref<8x256xf32, #tpu.memory_space<vmem>>, vector<8x256xf32>
    tpu.vector_store %arg5[%c0_16, %c0_17], %33 {strides = array<i32>} : memref<8x256xf32, #tpu.memory_space<vmem>>, vector<8x256xf32>,
    return
  }
  func.func @transform_0(%arg0: i32) -> (i32, i32) {
    %c0_i32 = arith.constant 0 : i32
    %c0_i32_0 = arith.constant 0 : i32
    %c0_i32_1 = arith.constant 0 : i32
    return %c0_i32, %c0_i32_0 : i32, i32
  }
  func.func @transform_1(%arg0: i32) -> (i32, i32) {
    %c0_i32 = arith.constant 0 : i32
    %c0_i32_0 = arith.constant 0 : i32
    %c0_i32_1 = arith.constant 0 : i32
    return %c0_i32, %c0_i32_0 : i32, i32
  }
  func.func @transform_2(%arg0: i32) -> (i32, i32) {
    %c0_i32 = arith.constant 0 : i32
    %c0_i32_0 = arith.constant 0 : i32
    %c0_i32_1 = arith.constant 0 : i32
    return %c0_i32, %c0_i32_0 : i32, i32
  }
  func.func @transform_3(%arg0: i32) -> (i32, i32) {
    %c0_i32 = arith.constant 0 : i32
    %c0_i32_0 = arith.constant 0 : i32
    %c0_i32_1 = arith.constant 0 : i32
    return %c0_i32, %c0_i32_0 : i32, i32
  }
  func.func @transform_4(%arg0: i32) -> (i32, i32) {
    %c0_i32 = arith.constant 0 : i32
    %c0_i32_0 = arith.constant 0 : i32
    %c0_i32_1 = arith.constant 0 : i32
    return %c0_i32, %c0_i32_0 : i32, i32
  }
}

</mosaic_0001>

<bundles_post_ra>
// kernel: tpu_custom_call.1
= control target key start
LH: loop header
LB: loop body
LE: loop exit
PB: predicated region body
PF: predicated region fallthrough
CT: control target
= control target key end

     0   :  { %9 = vsyncpa [#allocation3], 0  ;;  %s798_s0 = inlined_call_operand.hbm [shape: f32[8,256], index: 0, kind: input, shape index: {}]   ;;  %s799_s1 = inlined_call_operand.hbm [shape: f32[256,256], index: 1, kind: input, shape index: {}]   ;;  %s800_s2 = inlined_call_operand.hbm [shape: f32[3,256], index: 2, kind: input, shape index: {}]   ;;  %s801_s3 = inlined_call_operand.hbm [shape: f32[256,256], index: 3, kind: input, shape index: {}]   ;;  %s802_s4 = inlined_call_operand.hbm [shape: f32[8,256], index: 4, kind: output, shape index: {}]  }
   0x1   :  { %10 = vsyncpa [#allocation6], 0 }
   0x2   :  { %11 = vsyncpa [#allocation9], 0 }
   0x3   :  { %12 = vsyncpa [#allocation4], 0  ;;  %s700_s15 = smov [#allocation5]   ;;  %s582_s19 = scalar_lea.hbm %s799_s1, 8192 }
   0x4   :  { %s28_s16 = sshll.u32 %s700_s15, 4  ;;  %p583_p0 = scmp.ne.s32.totalorder %s799_s1, %s582_s19  ;;  %s29_s16 = int_to_ptr.vmem [resolvable:$true] %s28_s16 }
   0x5   :  { %p586_p1 = scmp.lt.u32.totalorder %s582_s19, %s799_s1 }
   0x7   :  { %p588_p2 = pnand %p586_p1, %p583_p0 }
   0x9   :  { %591 = shalt.err (!%p588_p2)
}
   0xa   :  { %s592_s24 = scalar_lea.vmem %s29_s16, 8192  ;;  %p597_p4 = scmp.lt.s32.totalorder %s29_s16, %s29_s16 }
   0xb   :  { %p593_p3 = scmp.ne.s32.totalorder %s29_s16, %s592_s24  ;;  %p598_p5 = scmp.lt.s32.totalorder %s592_s24, %s592_s24 }
   0xd   :  { %p599_p6 = por %p598_p5, %p597_p4 }
   0xf   :  { %p600_p7 = pnand %p599_p6, %p593_p3 }
  0x11   :  { %603 = shalt.err (!%p600_p7)
}
  0x12   :  { %s701_s25 = smov 256   ;;  %s702_s26 = smov 16  }
  0x13   :  { %34 = dma.hbm_to_vmem [thread:$0]  %s799_s1, 8192, %s29_s16, [#allocation6], %s701_s25, %s701_s25, %s702_s26  }
  0x14   :  { %s703_s29 = smov [#allocation2]   ;;  %s704_s5 = smov [#allocation7]  }
  0x15   :  { %s19_s30 = sshll.u32 %s703_s29, 4  ;;  %s41_s6 = sshll.u32 %s704_s5, 4  ;;  %s20_s30 = int_to_ptr.vmem [resolvable:$true] %s19_s30  ;;  %s42_s6 = int_to_ptr.vmem [resolvable:$true] %s41_s6 }
  0x16   :  { %s604_s9 = scalar_lea.hbm %s798_s0, 256 }
  0x17   :  { %p605_p8 = scmp.ne.s32.totalorder %s798_s0, %s604_s9  ;;  %p608_p9 = scmp.lt.u32.totalorder %s604_s9, %s798_s0 }
  0x19   :  { %p610_p10 = pnand %p608_p9, %p605_p8 }
  0x1b   :  { %613 = shalt.err (!%p610_p10)
}
  0x1c   :  { %s614_s1 = scalar_lea.vmem %s20_s30, 256  ;;  %p619_p12 = scmp.lt.s32.totalorder %s20_s30, %s20_s30 }
  0x1d   :  { %p615_p11 = scmp.ne.s32.totalorder %s20_s30, %s614_s1  ;;  %p620_p13 = scmp.lt.s32.totalorder %s614_s1, %s614_s1 }
  0x1f   :  { %p621_p0 = por %p620_p13, %p619_p12 }
  0x21   :  { %p622_p1 = pnand %p621_p0, %p615_p11 }
  0x23   :  { %625 = shalt.err (!%p622_p1)
}
  0x24   :  { %22 = dma.hbm_to_vmem [thread:$0]  %s798_s0, 256, %s20_s30, [#allocation3]  }
  0x25   :  { %s626_s18 = scalar_lea.hbm %s800_s2, 128 }
  0x26   :  { %p627_p2 = scmp.ne.s32.totalorder %s800_s2, %s626_s18  ;;  %p630_p3 = scmp.lt.u32.totalorder %s626_s18, %s800_s2 }
  0x28   :  { %p632_p4 = pnand %p630_p3, %p627_p2 }
  0x2a   :  { %635 = shalt.err (!%p632_p4)
}
  0x2b   :  { %s636_s23 = scalar_lea.vmem %s42_s6, 128  ;;  %p641_p6 = scmp.lt.s32.totalorder %s42_s6, %s42_s6 }
  0x2c   :  { %p637_p5 = scmp.ne.s32.totalorder %s42_s6, %s636_s23  ;;  %p642_p7 = scmp.lt.s32.totalorder %s636_s23, %s636_s23 }
  0x2e   :  { %p643_p8 = por %p642_p7, %p641_p6 }
  0x30   :  { %p644_p9 = pnand %p643_p8, %p637_p5 }
  0x32   :  { %647 = shalt.err (!%p644_p9)
}
  0x33   :  { %44 = dma.hbm_to_vmem [thread:$0]  %s800_s2, 128, %s42_s6, [#allocation6]  }
  0x34   :  { %s705_s27 = smov [#allocation8]   ;;  %s648_s5 = scalar_lea.hbm %s801_s3, 8192 }
  0x35   :  { %s50_s28 = sshll.u32 %s705_s27, 4  ;;  %p649_p10 = scmp.ne.s32.totalorder %s801_s3, %s648_s5  ;;  %s51_s28 = int_to_ptr.vmem [resolvable:$true] %s50_s28 }
  0x36   :  { %p652_p11 = scmp.lt.u32.totalorder %s648_s5, %s801_s3 }
  0x38   :  { %p654_p12 = pnand %p652_p11, %p649_p10 }
  0x3a   :  { %657 = shalt.err (!%p654_p12)
}
  0x3b   :  { %s658_s11 = scalar_lea.vmem %s51_s28, 8192  ;;  %p663_p0 = scmp.lt.s32.totalorder %s51_s28, %s51_s28 }
  0x3c   :  { %p659_p13 = scmp.ne.s32.totalorder %s51_s28, %s658_s11  ;;  %p664_p1 = scmp.lt.s32.totalorder %s658_s11, %s658_s11 }
  0x3e   :  { %p665_p2 = por %p664_p1, %p663_p0 }
  0x40   :  { %p666_p3 = pnand %p665_p2, %p659_p13 }
  0x42   :  { %669 = shalt.err (!%p666_p3)
}
  0x43   :  { %56 = dma.hbm_to_vmem [thread:$0]  %s801_s3, 8192, %s51_s28, [#allocation9], %s701_s25, %s701_s25, %s702_s26  }
  0x44   :  { %692 = dma.done.wait [#allocation3], 256  }
  0x45   :  { %693 = vsyncadd [#allocation3], 4294967040 }
  0x46   :  { %694 = dma.done.wait [#allocation6], 8320  }
  0x47   :  { %695 = vsyncadd [#allocation6], 4294958976 }
  0x48   :  { %696 = dma.done.wait [#allocation9], 8192  }
  0x49   :  { %697 = vsyncadd [#allocation9], 4294959104  ;;  %v72_v0 = vld [vmem:[#allocation5 + $0x8] sm:$0xff]  ;;  %v74_v1 = vld [vmem:[#allocation5 + $0x18] sm:$0xff]  ;;  %s706_s3 = smov [#allocation10]  }
  0x4a   :  { %v71_v2 = vld [vmem:[#allocation5] sm:$0xff]  ;;  %v443_v3 = vpack.c.bf16 %v74_v1, %v72_v0  ;;  %v73_v4 = vld [vmem:[#allocation5 + $0x10] sm:$0xff]  ;;  %v76_v5 = vld [vmem:[#allocation5 + $0x28] sm:$0xff]  ;;  %s432_s25 = sshll.u32 %s706_s3, 4  ;;  %s433_s25 = int_to_ptr.vmem [resolvable:$true] %s432_s25 }
  0x4b   :  { %v78_v6 = vld [vmem:[#allocation5 + $0x38] sm:$0xff]  ;;  %v445_v7 = vpack.c.bf16 %v73_v4, %v71_v2  ;;  %v75_v9 = vld [vmem:[#allocation5 + $0x20] sm:$0xff]  ;;  %v77_v10 = vld [vmem:[#allocation5 + $0x30] sm:$0xff]  ;;  %s670_s26 = scalar_lea.vmem %s433_s25, 256  ;;  %p675_p5 = scmp.lt.s32.totalorder %s433_s25, %s433_s25 }
  0x4c   :  { %v447_v8 = vpack.c.bf16 %v78_v6, %v76_v5  ;;  %v80_v11 = vld [vmem:[#allocation5 + $0x48] sm:$0xff]  ;;  %444 = vmatprep.subr.bf16.mxu0 %v443_v3  ;;  %v82_v12 = vld [vmem:[#allocation5 + $0x58] sm:$0xff]  ;;  %v449_v13 = vpack.c.bf16 %v77_v10, %v75_v9  ;;  %v79_v15 = vld [vmem:[#allocation5 + $0x40] sm:$0xff]  ;;  %p671_p4 = scmp.ne.s32.totalorder %s433_s25, %s670_s26  ;;  %p676_p6 = scmp.lt.s32.totalorder %s670_s26, %s670_s26 }
  0x4d   :  { %446 = vmatpush1.bf16.msra.mxu0 %v445_v7  ;;  %v451_v14 = vpack.c.bf16 %v82_v12, %v80_v11  ;;  %v81_v16 = vld [vmem:[#allocation5 + $0x50] sm:$0xff]  ;;  %v84_v17 = vld [vmem:[#allocation5 + $0x68] sm:$0xff]  ;;  %v86_v18 = vld [vmem:[#allocation5 + $0x78] sm:$0xff] }
  0x4e   :  { %448 = vmatprep.subr.bf16.mxu0 %v447_v8  ;;  %v453_v19 = vpack.c.bf16 %v81_v16, %v79_v15  ;;  %v455_v20 = vpack.c.bf16 %v86_v18, %v84_v17  ;;  %v83_v21 = vld [vmem:[#allocation5 + $0x60] sm:$0xff]  ;;  %v85_v22 = vld [vmem:[#allocation5 + $0x70] sm:$0xff]  ;;  %v88_v23 = vld [vmem:[#allocation5 + $0x88] sm:$0xff]  ;;  %p677_p7 = por %p676_p6, %p675_p5 }
  0x4f   :  { %v90_v24 = vld [vmem:[#allocation5 + $0x98] sm:$0xff]  ;;  %v457_v25 = vpack.c.bf16 %v85_v22, %v83_v21  ;;  %v87_v27 = vld [vmem:[#allocation5 + $0x80] sm:$0xff]  ;;  %v89_v28 = vld [vmem:[#allocation5 + $0x90] sm:$0xff] }
  0x50   :  { %v459_v26 = vpack.c.bf16 %v90_v24, %v88_v23  ;;  %v92_v29 = vld [vmem:[#allocation5 + $0xa8] sm:$0xff]  ;;  %v94_v30 = vld [vmem:[#allocation5 + $0xb8] sm:$0xff]  ;;  %v461_v31 = vpack.c.bf16 %v89_v28, %v87_v27  ;;  %v91_v33 = vld [vmem:[#allocation5 + $0xa0] sm:$0xff]  ;;  %p678_p8 = pnand %p677_p7, %p671_p4 }
  0x51   :  { %450 = vmatpush1.bf16.msra.mxu0 %v449_v13  ;;  %v463_v32 = vpack.c.bf16 %v94_v30, %v92_v29  ;;  %v93_v34 = vld [vmem:[#allocation5 + $0xb0] sm:$0xff]  ;;  %v96_v35 = vld [vmem:[#allocation5 + $0xc8] sm:$0xff]  ;;  %v98_v36 = vld [vmem:[#allocation5 + $0xd8] sm:$0xff] }
  0x52   :  { %452 = vmatprep.subr.bf16.mxu0 %v451_v14  ;;  %v465_v37 = vpack.c.bf16 %v93_v34, %v91_v33  ;;  %v95_v38 = vld [vmem:[#allocation5 + $0xc0] sm:$0xff]  ;;  %v97_v39 = vld [vmem:[#allocation5 + $0xd0] sm:$0xff]  ;;  %v467_v40 = vpack.c.bf16 %v98_v36, %v96_v35  ;;  %v100_v41 = vld [vmem:[#allocation5 + $0xe8] sm:$0xff] }
  0x53   :  { %v102_v42 = vld [vmem:[#allocation5 + $0xf8] sm:$0xff]  ;;  %v288_v44 = vld [vmem:[#allocation8 + $0x8] sm:$0xff]  ;;  %v290_v45 = vld [vmem:[#allocation8 + $0x18] sm:$0xff]  ;;  %v469_v51 = vpack.c.bf16 %v97_v39, %v95_v38 }
  0x54   :  { %v70_v43 = vld [vmem:[#allocation2 + $0x8] sm:$0xff]  ;;  %v287_v46 = vld [vmem:[#allocation8] sm:$0xff]  ;;  %v507_v47 = vpack.c.bf16 %v290_v45, %v288_v44  ;;  %v292_v49 = vld [vmem:[#allocation8 + $0x28] sm:$0xff]  ;;  %v471_v56 = vpack.c.bf16 %v102_v42, %v100_v41 }
  0x55   :  { %454 = vmatpush1.bf16.msra.mxu0 %v453_v19  ;;  %211 = vmatprep.mubr.f32.mxu0 %v70_v43  ;;  %v289_v48 = vld [vmem:[#allocation8 + $0x10] sm:$0xff]  ;;  %v294_v50 = vld [vmem:[#allocation8 + $0x38] sm:$0xff]  ;;  %v291_v54 = vld [vmem:[#allocation8 + $0x20] sm:$0xff] }
  0x56   :  { %456 = vmatprep.subr.bf16.mxu0 %v455_v20  ;;  %v509_v52 = vpack.c.bf16 %v289_v48, %v287_v46  ;;  %v511_v53 = vpack.c.bf16 %v294_v50, %v292_v49  ;;  %v293_v55 = vld [vmem:[#allocation8 + $0x30] sm:$0xff]  ;;  %v99_v57 = vld [vmem:[#allocation5 + $0xe0] sm:$0xff]  ;;  %v101_v58 = vld [vmem:[#allocation5 + $0xf0] sm:$0xff]  ;;  %508 = vmatprep.subr.bf16.mxu1 %v507_v47 }
  0x57   :  { %v104_v59 = vld [vmem:[#allocation5 + $0x108] sm:$0xff]  ;;  %v106_v60 = vld [vmem:[#allocation5 + $0x118] sm:$0xff]  ;;  %v513_v61 = vpack.c.bf16 %v293_v55, %v291_v54  ;;  %v473_v62 = vpack.c.bf16 %v101_v58, %v99_v57  ;;  %v103_v0 = vld [vmem:[#allocation5 + $0x100] sm:$0xff] }
  0x58   :  { %510 = vmatpush1.bf16.msra.mxu1 %v509_v52  ;;  %v475_v63 = vpack.c.bf16 %v106_v60, %v104_v59  ;;  %v105_v1 = vld [vmem:[#allocation5 + $0x110] sm:$0xff]  ;;  %v108_v2 = vld [vmem:[#allocation5 + $0x128] sm:$0xff]  ;;  %v110_v3 = vld [vmem:[#allocation5 + $0x138] sm:$0xff] }
  0x59   :  { %458 = vmatpush1.bf16.msra.mxu0 %v457_v25  ;;  %512 = vmatprep.subr.bf16.mxu1 %v511_v53  ;;  %v477_v4 = vpack.c.bf16 %v105_v1, %v103_v0  ;;  %v479_v5 = vpack.c.bf16 %v110_v3, %v108_v2  ;;  %v107_v6 = vld [vmem:[#allocation5 + $0x120] sm:$0xff]  ;;  %v109_v7 = vld [vmem:[#allocation5 + $0x130] sm:$0xff]  ;;  %v112_v8 = vld [vmem:[#allocation5 + $0x148] sm:$0xff] }
  0x5a   :  { %460 = vmatprep.subr.bf16.mxu0 %v459_v26  ;;  %v114_v9 = vld [vmem:[#allocation5 + $0x158] sm:$0xff]  ;;  %v481_v10 = vpack.c.bf16 %v109_v7, %v107_v6  ;;  %v111_v12 = vld [vmem:[#allocation5 + $0x140] sm:$0xff]  ;;  %v113_v13 = vld [vmem:[#allocation5 + $0x150] sm:$0xff] }
  0x5b   :  { %v483_v11 = vpack.c.bf16 %v114_v9, %v112_v8  ;;  %v116_v14 = vld [vmem:[#allocation5 + $0x168] sm:$0xff]  ;;  %v118_v15 = vld [vmem:[#allocation5 + $0x178] sm:$0xff]  ;;  %v485_v16 = vpack.c.bf16 %v113_v13, %v111_v12  ;;  %v115_v18 = vld [vmem:[#allocation5 + $0x160] sm:$0xff] }
  0x5c   :  { %514 = vmatpush1.bf16.msra.mxu1 %v513_v61  ;;  %v487_v17 = vpack.c.bf16 %v118_v15, %v116_v14  ;;  %v117_v19 = vld [vmem:[#allocation5 + $0x170] sm:$0xff]  ;;  %v120_v20 = vld [vmem:[#allocation5 + $0x188] sm:$0xff]  ;;  %v122_v21 = vld [vmem:[#allocation5 + $0x198] sm:$0xff] }
  0x5d   :  { %462 = vmatpush1.bf16.msra.mxu0 %v461_v31  ;;  %v489_v22 = vpack.c.bf16 %v117_v19, %v115_v18  ;;  %v491_v23 = vpack.c.bf16 %v122_v21, %v120_v20  ;;  %v119_v24 = vld [vmem:[#allocation5 + $0x180] sm:$0xff]  ;;  %v121_v25 = vld [vmem:[#allocation5 + $0x190] sm:$0xff]  ;;  %v124_v26 = vld [vmem:[#allocation5 + $0x1a8] sm:$0xff] }
  0x5e   :  { %464 = vmatprep.subr.bf16.mxu0 %v463_v32  ;;  %v126_v27 = vld [vmem:[#allocation5 + $0x1b8] sm:$0xff]  ;;  %v493_v28 = vpack.c.bf16 %v121_v25, %v119_v24  ;;  %v123_v30 = vld [vmem:[#allocation5 + $0x1a0] sm:$0xff]  ;;  %v125_v31 = vld [vmem:[#allocation5 + $0x1b0] sm:$0xff] }
  0x5f   :  { %v495_v29 = vpack.c.bf16 %v126_v27, %v124_v26  ;;  %v128_v32 = vld [vmem:[#allocation5 + $0x1c8] sm:$0xff]  ;;  %v130_v33 = vld [vmem:[#allocation5 + $0x1d8] sm:$0xff]  ;;  %v497_v34 = vpack.c.bf16 %v125_v31, %v123_v30  ;;  %v127_v36 = vld [vmem:[#allocation5 + $0x1c0] sm:$0xff] }
  0x60   :  { %v499_v35 = vpack.c.bf16 %v130_v33, %v128_v32  ;;  %v132_v38 = vld [vmem:[#allocation5 + $0x1e8] sm:$0xff]  ;;  %v134_v39 = vld [vmem:[#allocation5 + $0x1f8] sm:$0xff]  ;;  %v131_v42 = vld [vmem:[#allocation5 + $0x1e0] sm:$0xff] }
  0x61   :  { %466 = vmatpush1.bf16.msra.mxu0 %v465_v37  ;;  %v129_v37 = vld [vmem:[#allocation5 + $0x1d0] sm:$0xff]  ;;  %v503_v41 = vpack.c.bf16 %v134_v39, %v132_v38  ;;  %v298_v47 = vld [vmem:[#allocation8 + $0x58] sm:$0xff]  ;;  %v295_v49 = vld [vmem:[#allocation8 + $0x40] sm:$0xff] }
  0x62   :  { %468 = vmatprep.subr.bf16.mxu0 %v467_v40  ;;  %v501_v40 = vpack.c.bf16 %v129_v37, %v127_v36  ;;  %v133_v43 = vld [vmem:[#allocation5 + $0x1f0] sm:$0xff]  ;;  %v297_v50 = vld [vmem:[#allocation8 + $0x50] sm:$0xff]  ;;  %v302_v53 = vld [vmem:[#allocation8 + $0x78] sm:$0xff] }
  0x63   :  { %v505_v44 = vpack.c.bf16 %v133_v43, %v131_v42  ;;  %v69_v45 = vld [vmem:[#allocation2] sm:$0xff]  ;;  %v299_v55 = vld [vmem:[#allocation8 + $0x60] sm:$0xff]  ;;  %v306_v59 = vld [vmem:[#allocation8 + $0x98] sm:$0xff] }
  0x64   :  { %v296_v46 = vld [vmem:[#allocation8 + $0x48] sm:$0xff]  ;;  %v303_v61 = vld [vmem:[#allocation8 + $0x80] sm:$0xff]  ;;  %v310_v1 = vld [vmem:[#allocation8 + $0xb8] sm:$0xff] }
  0x65   :  { %470 = vmatpush1.bf16.msra.mxu0 %v469_v51  ;;  %v515_v48 = vpack.c.bf16 %v298_v47, %v296_v46  ;;  %v517_v51 = vpack.c.bf16 %v297_v50, %v295_v49  ;;  %v300_v52 = vld [vmem:[#allocation8 + $0x68] sm:$0xff]  ;;  %v307_v3 = vld [vmem:[#allocation8 + $0xa0] sm:$0xff]  ;;  %v314_v7 = vld [vmem:[#allocation8 + $0xd8] sm:$0xff] }
  0x66   :  { %472 = vmatprep.subr.bf16.mxu0 %v471_v56  ;;  %v519_v54 = vpack.c.bf16 %v302_v53, %v300_v52  ;;  %v301_v56 = vld [vmem:[#allocation8 + $0x70] sm:$0xff]  ;;  %v304_v58 = vld [vmem:[#allocation8 + $0x88] sm:$0xff]  ;;  %v311_v9 = vld [vmem:[#allocation8 + $0xc0] sm:$0xff] }
  0x67   :  { %516 = vmatprep.subr.bf16.mxu1 %v515_v48  ;;  %v521_v57 = vpack.c.bf16 %v301_v56, %v299_v55  ;;  %v523_v60 = vpack.c.bf16 %v306_v59, %v304_v58  ;;  %v308_v0 = vld [vmem:[#allocation8 + $0xa8] sm:$0xff]  ;;  %v318_v13 = vld [vmem:[#allocation8 + $0xf8] sm:$0xff]  ;;  %v315_v15 = vld [vmem:[#allocation8 + $0xe0] sm:$0xff] }
  0x68   :  { %518 = vmatpush1.bf16.msra.mxu1 %v517_v51  ;;  %v527_v2 = vpack.c.bf16 %v310_v1, %v308_v0  ;;  %v312_v6 = vld [vmem:[#allocation8 + $0xc8] sm:$0xff]  ;;  %v322_v19 = vld [vmem:[#allocation8 + $0x118] sm:$0xff]  ;;  %v319_v21 = vld [vmem:[#allocation8 + $0x100] sm:$0xff] }
  0x69   :  { %474 = vmatpush1.bf16.msra.mxu0 %v473_v62  ;;  %520 = vmatprep.subr.bf16.mxu1 %v519_v54  ;;  %v305_v62 = vld [vmem:[#allocation8 + $0x90] sm:$0xff]  ;;  %v531_v8 = vpack.c.bf16 %v314_v7, %v312_v6  ;;  %v316_v12 = vld [vmem:[#allocation8 + $0xe8] sm:$0xff]  ;;  %v326_v25 = vld [vmem:[#allocation8 + $0x138] sm:$0xff] }
  0x6a   :  { %476 = vmatprep.subr.bf16.mxu0 %v475_v63  ;;  %v525_v63 = vpack.c.bf16 %v305_v62, %v303_v61  ;;  %v535_v14 = vpack.c.bf16 %v318_v13, %v316_v12  ;;  %v320_v18 = vld [vmem:[#allocation8 + $0x108] sm:$0xff]  ;;  %v323_v27 = vld [vmem:[#allocation8 + $0x120] sm:$0xff]  ;;  %v330_v31 = vld [vmem:[#allocation8 + $0x158] sm:$0xff] }
  0x6b   :  { %v539_v20 = vpack.c.bf16 %v322_v19, %v320_v18  ;;  %v324_v24 = vld [vmem:[#allocation8 + $0x128] sm:$0xff]  ;;  %v327_v33 = vld [vmem:[#allocation8 + $0x140] sm:$0xff]  ;;  %v334_v37 = vld [vmem:[#allocation8 + $0x178] sm:$0xff] }
  0x6c   :  { %522 = vmatpush1.bf16.msra.mxu1 %v521_v57  ;;  %v543_v26 = vpack.c.bf16 %v326_v25, %v324_v24  ;;  %v328_v30 = vld [vmem:[#allocation8 + $0x148] sm:$0xff]  ;;  %v331_v39 = vld [vmem:[#allocation8 + $0x160] sm:$0xff]  ;;  %v338_v43 = vld [vmem:[#allocation8 + $0x198] sm:$0xff] }
  0x6d   :  { %478 = vmatpush1.bf16.msra.mxu0 %v477_v4  ;;  %524 = vmatprep.subr.bf16.mxu1 %v523_v60  ;;  %v309_v4 = vld [vmem:[#allocation8 + $0xb0] sm:$0xff]  ;;  %v547_v32 = vpack.c.bf16 %v330_v31, %v328_v30  ;;  %v332_v36 = vld [vmem:[#allocation8 + $0x168] sm:$0xff]  ;;  %v342_v49 = vld [vmem:[#allocation8 + $0x1b8] sm:$0xff] }
  0x6e   :  { %480 = vmatprep.subr.bf16.mxu0 %v479_v5  ;;  %v529_v5 = vpack.c.bf16 %v309_v4, %v307_v3  ;;  %v551_v38 = vpack.c.bf16 %v334_v37, %v332_v36  ;;  %v336_v42 = vld [vmem:[#allocation8 + $0x188] sm:$0xff]  ;;  %v337_v46 = vld [vmem:[#allocation8 + $0x190] sm:$0xff]  ;;  %v339_v51 = vld [vmem:[#allocation8 + $0x1a0] sm:$0xff] }
  0x6f   :  { %v340_v48 = vld [vmem:[#allocation8 + $0x1a8] sm:$0xff]  ;;  %v341_v52 = vld [vmem:[#allocation8 + $0x1b0] sm:$0xff]  ;;  %v346_v55 = vld [vmem:[#allocation8 + $0x1d8] sm:$0xff] }
  0x70   :  { %526 = vmatpush1.bf16.msra.mxu1 %v525_v63  ;;  %v559_v50 = vpack.c.bf16 %v342_v49, %v340_v48  ;;  %v561_v53 = vpack.c.bf16 %v341_v52, %v339_v51  ;;  %v344_v54 = vld [vmem:[#allocation8 + $0x1c8] sm:$0xff]  ;;  %v343_v57 = vld [vmem:[#allocation8 + $0x1c0] sm:$0xff]  ;;  %v345_v58 = vld [vmem:[#allocation8 + $0x1d0] sm:$0xff] }
  0x71   :  { %482 = vmatpush1.bf16.msra.mxu0 %v481_v10  ;;  %528 = vmatprep.subr.bf16.mxu1 %v527_v2  ;;  %v313_v10 = vld [vmem:[#allocation8 + $0xd0] sm:$0xff]  ;;  %v563_v56 = vpack.c.bf16 %v346_v55, %v344_v54  ;;  %v565_v59 = vpack.c.bf16 %v345_v58, %v343_v57  ;;  %v348_v60 = vld [vmem:[#allocation8 + $0x1e8] sm:$0xff]  ;;  %v350_v61 = vld [vmem:[#allocation8 + $0x1f8] sm:$0xff]  ;;  %v137_v2 = vlaneseq }
  0x72   :  { %484 = vmatprep.subr.bf16.mxu0 %v483_v11  ;;  %v533_v11 = vpack.c.bf16 %v313_v10, %v311_v9  ;;  %v347_v62 = vld [vmem:[#allocation8 + $0x1e0] sm:$0xff]  ;;  %v567_v63 = vpack.c.bf16 %v350_v61, %v348_v60  ;;  %v349_v0 = vld [vmem:[#allocation8 + $0x1f0] sm:$0xff]  ;;  %v273_v49 = vld [vmem:[#allocation7 + $0x2] ss:$4 sm:$0x3] }
  0x73   :  { %v569_v1 = vpack.c.bf16 %v349_v0, %v347_v62  ;;  %v138_v3 = vshrl.u32 %v137_v2, 7 }
  0x74   :  { %530 = vmatpush1.bf16.msra.mxu1 %v529_v5  ;;  %v135_v5 = vld [vmem:[#allocation7] ss:$4 sm:$0x3] }
  0x75   :  { %486 = vmatpush1.bf16.msra.mxu0 %v485_v16  ;;  %532 = vmatprep.subr.bf16.mxu1 %v531_v8  ;;  %v317_v16 = vld [vmem:[#allocation8 + $0xf0] sm:$0xff]  ;;  %v139_v4 = vsub.s32 0, %v138_v3  ;;  %v143_v6 = vsub.s32 1, %v138_v3 }
  0x76   :  { %488 = vmatprep.subr.bf16.mxu0 %v487_v17  ;;  %v537_v17 = vpack.c.bf16 %v317_v16, %v315_v15 }
  0x77   :  { %v140_v7 = vrot.slane %v135_v5, %v139_v4  ;;  %v144_v8 = vrot.slane %v135_v5, %v143_v6  ;;  %v282_v55 = vrot.slane %v273_v49, %v143_v6 }
  0x78   :  { %534 = vmatpush1.bf16.msra.mxu1 %v533_v11 }
  0x79   :  { %490 = vmatpush1.bf16.msra.mxu0 %v489_v22  ;;  %536 = vmatprep.subr.bf16.mxu1 %v535_v14  ;;  %v321_v22 = vld [vmem:[#allocation8 + $0x110] sm:$0xff] }
  0x7a   :  { %492 = vmatprep.subr.bf16.mxu0 %v491_v23  ;;  %v541_v23 = vpack.c.bf16 %v321_v22, %v319_v21 }
  0x7c   :  { %538 = vmatpush1.bf16.msra.mxu1 %v537_v17 }
  0x7d   :  { %494 = vmatpush1.bf16.msra.mxu0 %v493_v28  ;;  %540 = vmatprep.subr.bf16.mxu1 %v539_v20  ;;  %v325_v28 = vld [vmem:[#allocation8 + $0x130] sm:$0xff] }
  0x7e   :  { %496 = vmatprep.subr.bf16.mxu0 %v495_v29  ;;  %v545_v29 = vpack.c.bf16 %v325_v28, %v323_v27 }
  0x80   :  { %542 = vmatpush1.bf16.msra.mxu1 %v541_v23 }
  0x81   :  { %498 = vmatpush1.bf16.msra.mxu0 %v497_v34  ;;  %544 = vmatprep.subr.bf16.mxu1 %v543_v26  ;;  %v329_v34 = vld [vmem:[#allocation8 + $0x150] sm:$0xff] }
  0x82   :  { %500 = vmatprep.subr.bf16.mxu0 %v499_v35  ;;  %v549_v35 = vpack.c.bf16 %v329_v34, %v327_v33 }
  0x84   :  { %546 = vmatpush1.bf16.msra.mxu1 %v545_v29 }
  0x85   :  { %502 = vmatpush1.bf16.msra.mxu0 %v501_v40  ;;  %548 = vmatprep.subr.bf16.mxu1 %v547_v32  ;;  %v333_v40 = vld [vmem:[#allocation8 + $0x170] sm:$0xff] }
  0x86   :  { %504 = vmatprep.subr.bf16.mxu0 %v503_v41  ;;  %v553_v41 = vpack.c.bf16 %v333_v40, %v331_v39 }
  0x88   :  { %550 = vmatpush1.bf16.msra.mxu1 %v549_v35 }
  0x89   :  { %506 = vmatpush1.bf16.msra.mxu0 %v505_v44  ;;  %552 = vmatprep.subr.bf16.mxu1 %v551_v38  ;;  %v555_v44 = vpack.c.bf16 %v338_v43, %v336_v42 }
  0x8c   :  { %212 = vmatmul.mubr.f32.vlgmr.msra.gmra.mrb[0].mxu0 %v69_v45  ;;  %554 = vmatpush1.bf16.msra.mxu1 %v553_v41  ;;  %v335_v45 = vld [vmem:[#allocation8 + $0x180] sm:$0xff] }
  0x8d   :  { %v557_v47 = vpack.c.bf16 %v337_v46, %v335_v45  ;;  %556 = vmatprep.subr.bf16.mxu1 %v555_v44 }
  0x90   :  { %558 = vmatpush1.bf16.msra.mxu1 %v557_v47  ;;  %v258_v47 = vld [vmem:[#allocation7 + $0x1] ss:$4 sm:$0x3] }
  0x91   :  { %560 = vmatprep.subr.bf16.mxu1 %v559_v50  ;;  %v263_v48 = vrot.slane %v258_v47, %v139_v4  ;;  %v267_v51 = vrot.slane %v258_v47, %v143_v6 }
  0x94   :  { %562 = vmatpush1.bf16.msra.mxu1 %v561_v53 }
  0x95   :  { %564 = vmatprep.subr.bf16.mxu1 %v563_v56  ;;  %v278_v56 = vrot.slane %v273_v49, %v139_v4 }
  0x98   :  { %566 = vmatpush1.bf16.msra.mxu1 %v565_v59 }
  0x99   :  { %568 = vmatprep.subr.bf16.mxu1 %v567_v63 }
  0x9c   :  { %570 = vmatpush1.bf16.msra.mxu1 %v569_v1 }
 0x15f   :  { %v213_v9 = vpop.f32.mrb[0].mxu0 }
 0x160   :  { %v214_v10 = vadd.f32 %v213_v9, %v140_v7  ;;  %v215_v11 = vpop.f32.mrb[1].mxu0 }
 0x161   :  { %v216_v12 = vadd.f32 %v215_v11, %v144_v8 }
 0x162   :  { %v218_v13 = vrot.slane %v214_v10, 4 }
 0x163   :  { %v224_v14 = vrot.slane %v216_v12, 4 }
 0x164   :  { %v219_v15 = vadd.f32 %v218_v13, %v214_v10 }
 0x165   :  { %v225_v16 = vadd.f32 %v224_v14, %v216_v12 }
 0x166   :  { %v220_v17 = vrot.slane %v219_v15, 2 }
 0x167   :  { %v226_v18 = vrot.slane %v225_v16, 2 }
 0x168   :  { %v221_v19 = vadd.f32 %v220_v17, %v219_v15 }
 0x169   :  { %v227_v20 = vadd.f32 %v226_v18, %v225_v16 }
 0x16a   :  { %v222_v21 = vrot.slane %v221_v19, 1 }
 0x16b   :  { %v228_v22 = vrot.slane %v227_v20, 1 }
 0x16c   :  { %v223_v23 = vadd.f32 %v222_v21, %v221_v19 }
 0x16d   :  { %v229_v24 = vadd.f32 %v228_v22, %v227_v20 }
 0x16e   :  { %v231_v25 = vmul.f32 0.125, %v223_v23 }
 0x16f   :  { %v232_v26 = vmul.f32 0.125, %v229_v24 }
 0x170   :  { %v233_v27 = vsub.f32 %v214_v10, %v231_v25 }
 0x171   :  { %v234_v28 = vsub.f32 %v216_v12, %v232_v26 }
 0x172   :  { %v235_v29 = vmul.f32 %v233_v27, %v233_v27 }
 0x173   :  { %v236_v30 = vmul.f32 %v234_v28, %v234_v28 }
 0x174   :  { %v237_v31 = vrot.slane %v235_v29, 4 }
 0x175   :  { %v243_v32 = vrot.slane %v236_v30, 4 }
 0x176   :  { %v238_v33 = vadd.f32 %v237_v31, %v235_v29 }
 0x177   :  { %v244_v34 = vadd.f32 %v243_v32, %v236_v30 }
 0x178   :  { %v239_v35 = vrot.slane %v238_v33, 2 }
 0x179   :  { %v245_v36 = vrot.slane %v244_v34, 2 }
 0x17a   :  { %v240_v37 = vadd.f32 %v239_v35, %v238_v33 }
 0x17b   :  { %v246_v38 = vadd.f32 %v245_v36, %v244_v34 }
 0x17c   :  { %v241_v39 = vrot.slane %v240_v37, 1 }
 0x17d   :  { %v247_v40 = vrot.slane %v246_v38, 1 }
 0x17e   :  { %v242_v41 = vadd.f32 %v241_v39, %v240_v37 }
 0x17f   :  { %v248_v42 = vadd.f32 %v247_v40, %v246_v38 }
 0x180   :  { %v249_v43 = vmul.f32 0.125, %v242_v41 }
 0x181   :  { %v250_v44 = vmul.f32 0.125, %v248_v42 }
 0x182   :  { %v251_v45 = vadd.f32 1e-05, %v249_v43 }
 0x183   :  { %v252_v46 = vadd.f32 1e-05, %v250_v44 }
 0x184   :  { %578 = vrsqrt.f32 %v251_v45 }
 0x185   :  { %580 = vrsqrt.f32 %v252_v46 }
 0x18e   :  { %v579_v50 = vpop.eup %578 }
 0x18f   :  { %v581_v52 = vpop.eup %580  ;;  %v255_v53 = vmul.f32 %v579_v50, %v233_v27 }
 0x190   :  { %v256_v54 = vmul.f32 %v581_v52, %v234_v28 }
 0x191   :  { %v270_v57 = vmul.f32 %v263_v48, %v255_v53 }
 0x192   :  { %v271_v58 = vmul.f32 %v267_v51, %v256_v54 }
 0x193   :  { %v285_v60 = vadd.f32 %v278_v56, %v270_v57 }
 0x194   :  { %v286_v59 = vadd.f32 %v282_v55, %v271_v58 }
 0x196   :  { %415 = vmatprep.mubr.f32.mxu1 %v286_v59 }
 0x197   :  { %416 = vmatmul.mubr.f32.vlgmr.msra.gmra.mrb[0].mxu1 %v285_v60 }
 0x26a   :  { %v417_v61 = vpop.f32.mrb[0].mxu1 }
 0x26b   :  { %v422_v62 = vmax.f32 %v417_v61, 0.0  ;;  %v419_v63 = vpop.f32.mrb[1].mxu1 }
 0x26c   :  { %v423_v0 = vmax.f32 %v419_v63, 0.0 }
 0x26d   :  { %424 = vst [vmem:[#allocation10] sm:$0xff] %v422_v62 }
 0x26e   :  { %425 = vst [vmem:[#allocation10 + $0x8] sm:$0xff] %v423_v0 }
 0x26f   :  { %681 = shalt.err (!%p678_p8)
}
 0x270   :  { %s682_s1 = scalar_lea.hbm %s802_s4, 256 }
 0x271   :  { %p683_p9 = scmp.ne.s32.totalorder %s802_s4, %s682_s1  ;;  %p686_p10 = scmp.lt.u32.totalorder %s682_s1, %s802_s4 }
 0x273   :  { %p688_p11 = pnand %p686_p10, %p683_p9 }
 0x275   :  { %691 = shalt.err (!%p688_p11)
}
 0x276   :  { %435 = dma.vmem_to_hbm [thread:$0]  %s433_s25, 256, %s802_s4, [#allocation4]  }
 0x277   :  { %698 = dma.done.wait [#allocation4], 256  }
 0x278   :  { %699 = vsyncadd [#allocation4], 4294967040 }
 0x279   :  { %439 = vsyncpa [#allocation3], 1 }
 0x27a   :  { %440 = vsyncpa [#allocation6], 1 }
 0x27b   :  { %441 = vsyncpa [#allocation9], 1 }
 0x27c   :  { %442 = vsyncpa [#allocation4], 1 }

</bundles_post_ra>
